<compile_context>
chip_gen: v6e
topology: v6e:2x2x1
jax: 0.10.0
libtpu: 0.0.40
codegen_flags: <defaults>
</compile_context>

<pallas_src>
import functools

import jax
import jax.numpy as jnp
from jax.experimental import pallas as pl
from jax.experimental.pallas import tpu as pltpu


def _round_up(x, m):
    return ((x + m - 1) // m) * m


def clf_block_kernel(z_ref, w1_ref, b1_ref, w2_ref, b2_ref, out_ref):
    # linear_1: bf16 MXU matmul with f32 accumulation; bias + ReLU in f32 (VPU).
    h = jnp.dot(z_ref[...], w1_ref[...], preferred_element_type=jnp.float32)
    h = jnp.maximum(h + b1_ref[...], 0.0)

    # linear_2: feed the MXU bf16 again; keep f32 accumulation and epilogue.
    logits = jnp.dot(h.astype(jnp.bfloat16), w2_ref[...],
                     preferred_element_type=jnp.float32) + b2_ref[...]

    # log_softmax over the class (last) dim == torch dim=1 for 2-D input.
    # exp/log go to the EUP slot, max/sum reductions to the XLU slot — both
    # off the MXU/DMA critical path, so no further micro-optimization needed.
    m = jnp.max(logits, axis=-1, keepdims=True)
    shifted = logits - m
    lse = jnp.log(jnp.sum(jnp.exp(shifted), axis=-1, keepdims=True))
    out_ref[...] = (shifted - lse).astype(out_ref.dtype)


@functools.partial(jax.jit, static_argnames=("block_b",))
def clf_block(z, w1, b1, w2, b2, *, block_b=1024):
    """z: (B, ipt_dim); w1: (ipt_dim, ipt_dim) bf16; b1: (1, ipt_dim) f32;
    w2: (ipt_dim, opt_classes) bf16; b2: (1, opt_classes) f32."""
    B, D = z.shape
    C = w2.shape[1]

    # Stream the activation in bf16: halves the dominant HBM read; under jit
    # this convert fuses with whatever upstream op produced z.
    z = z.astype(jnp.bfloat16)

    # Batch tile: cap at block_b; for smaller batches split into (at least)
    # two tiles so v7x's two TensorCores both get work on the "parallel" axis.
    # Tiles are multiples of 16 (bf16 sublane tile).  The last, possibly
    # partial, tile is handled by masked stores via the cdiv grid — no batch
    # padding and no wasted fully-padded rows.
    if B <= block_b:
        TB = max(16, _round_up((B + 1) // 2, 16))
    else:
        TB = block_b
    grid = (pl.cdiv(B, TB),)

    # VMEM budget: double-buffered z/out tiles + double-buffered resident
    # weights/biases, with generous headroom (capped at v7x-safe 64 MiB).
    vmem_bytes = 2 * (TB * D * 2 + TB * C * 4)        # z (bf16) / out (f32) tiles
    vmem_bytes += 2 * (D * D * 2 + D * C * 2)          # resident bf16 weights
    vmem_bytes += 2 * 8 * (D + C) * 4                  # biases (sublane-padded)
    vmem_limit = int(min(max(4 * vmem_bytes, 8 << 20), 64 << 20))

    return pl.pallas_call(
        clf_block_kernel,
        out_shape=jax.ShapeDtypeStruct((B, C), jnp.float32),
        grid=grid,
        in_specs=[
            pl.BlockSpec((TB, D), lambda i: (i, 0)),   # z: streamed batch tiles
            pl.BlockSpec((D, D), lambda i: (0, 0)),    # w1: resident in VMEM
            pl.BlockSpec((1, D), lambda i: (0, 0)),    # b1: resident
            pl.BlockSpec((D, C), lambda i: (0, 0)),    # w2: resident
            pl.BlockSpec((1, C), lambda i: (0, 0)),    # b2: resident
        ],
        out_specs=pl.BlockSpec((TB, C), lambda i: (i, 0)),
        compiler_params=pltpu.CompilerParams(
            dimension_semantics=("parallel",),
            vmem_limit_bytes=vmem_limit,
        ),
    )(z, w1, b1, w2, b2)


def init_params(key, ipt_dim, opt_classes):
    """nn.Linear-style init (uniform +/- 1/sqrt(fan_in)); weights stored
    (in, out) — i.e. already transposed vs torch's (out, in)."""
    k1, k2, k3, k4 = jax.random.split(key, 4)
    bound = 1.0 / (ipt_dim ** 0.5)
    w1 = jax.random.uniform(k1, (ipt_dim, ipt_dim), jnp.float32, -bound, bound)
    b1 = jax.random.uniform(k2, (ipt_dim,), jnp.float32, -bound, bound)
    w2 = jax.random.uniform(k3, (ipt_dim, opt_classes), jnp.float32, -bound, bound)
    b2 = jax.random.uniform(k4, (opt_classes,), jnp.float32, -bound, bound)
    return w1, b1, w2, b2


def prepare_params(w1, b1, w2, b2):
    """One-time param prep, outside the jitted per-step forward: cast matmul
    weights to bf16 (MXU-native), keep biases f32 with (1, N) broadcast shape."""
    return (w1.astype(jnp.bfloat16),
            b1.reshape(1, -1).astype(jnp.float32),
            w2.astype(jnp.bfloat16),
            b2.reshape(1, -1).astype(jnp.float32))


if __name__ == "__main__":
    B, ipt_dim, opt_classes = 64, 32, 16
    key = jax.random.PRNGKey(0)
    kz, kp = jax.random.split(key)
    z = jax.random.normal(kz, (B, ipt_dim), dtype=jnp.float32)
    w1, b1, w2, b2 = init_params(kp, ipt_dim, opt_classes)
    w1p, b1p, w2p, b2p = prepare_params(w1, b1, w2, b2)

    out = jax.block_until_ready(clf_block(z, w1p, b1p, w2p, b2p))
    assert out.shape == (B, opt_classes)

    # Reference mirroring the kernel's numerics (bf16 inputs, f32 accumulate).
    f32 = jnp.float32
    zb = z.astype(jnp.bfloat16).astype(f32)
    h = jnp.maximum(zb @ w1p.astype(f32) + b1p, 0.0)
    logits = h.astype(jnp.bfloat16).astype(f32) @ w2p.astype(f32) + b2p
    ref = jax.nn.log_softmax(logits, axis=1)
    assert jnp.allclose(out, ref, atol=1e-4, rtol=1e-4), "mismatch vs bf16 reference"

    # Coarse check vs the pure-f32 PyTorch-semantics reference (bf16 rounding only).
    h32 = jnp.maximum(z @ w1 + b1.reshape(1, -1), 0.0)
    ref32 = jax.nn.log_softmax(h32 @ w2 + b2.reshape(1, -1), axis=1)
    assert jnp.allclose(out, ref32, atol=0.1), "semantics drifted from f32 reference"

    print("KERNEL_OK")
</pallas_src>

<mosaic_0001>
module attributes {stable_mosaic.version = 11 : i64} {
  func.func @clf_block_kernel(%arg0: i32, %arg1: memref<32x32xbf16, #tpu.memory_space<vmem>>, %arg2: memref<32x32xbf16, #tpu.memory_space<vmem>>, %arg3: memref<1x32xf32, #tpu.memory_space<vmem>>, %arg4: memref<32x16xbf16, #tpu.memory_space<vmem>>, %arg5: memref<1x16xf32, #tpu.memory_space<vmem>>, %arg6: memref<32x16xf32, #tpu.memory_space<vmem>>) attributes {dimension_semantics = [#tpu.dimension_semantics<parallel>], iteration_bounds = array<i64: 2>, scalar_prefetch = 0 : i64, scratch_operands = 0 : i64, tpu.core_type = #tpu.core_type<tc>, window_params = [{transform_indices = @transform_0, window_bounds = array<i64: 32, 32>}, {pipeline_mode = #tpu.pipeline_mode<synchronous>, transform_indices = @transform_1, window_bounds = array<i64: 32, 32>}, {pipeline_mode = #tpu.pipeline_mode<synchronous>, transform_indices = @transform_2, window_bounds = array<i64: 1, 32>}, {pipeline_mode = #tpu.pipeline_mode<synchronous>, transform_indices = @transform_3, window_bounds = array<i64: 32, 16>}, {pipeline_mode = #tpu.pipeline_mode<synchronous>, transform_indices = @transform_4, window_bounds = array<i64: 1, 16>}, {transform_indices = @transform_5, window_bounds = array<i64: 32, 16>}]} {
    %c0 = arith.constant 0 : index
    %c0_0 = arith.constant 0 : index
    %0 = vector.load %arg1[%c0, %c0_0] : memref<32x32xbf16, #tpu.memory_space<vmem>>, vector<32x32xbf16>
    %c0_1 = arith.constant 0 : index
    %c0_2 = arith.constant 0 : index
    %1 = vector.load %arg2[%c0_1, %c0_2] : memref<32x32xbf16, #tpu.memory_space<vmem>>, vector<32x32xbf16>
    %cst = arith.constant dense<0.000000e+00> : vector<32x32xf32>
    %2 = tpu.matmul %0, %1, %cst {dimension_numbers = #tpu.dot_dimension_numbers<[1], [0], [0], [1], [0, 0, 1, 1], [], []>} : vector<32x32xbf16>, vector<32x32xbf16>, vector<32x32xf32> -> vector<32x32xf32>
    %c0_3 = arith.constant 0 : index
    %c0_4 = arith.constant 0 : index
    %3 = vector.load %arg3[%c0_3, %c0_4] : memref<1x32xf32, #tpu.memory_space<vmem>>, vector<1x32xf32>
    %4 = vector.broadcast %3 : vector<1x32xf32> to vector<32x32xf32>
    %5 = arith.addf %2, %4 : vector<32x32xf32>
    %cst_5 = arith.constant 0.000000e+00 : f32
    %6 = vector.broadcast %cst_5 : f32 to vector<32x32xf32>
    %7 = arith.maximumf %5, %6 : vector<32x32xf32>
    %8 = arith.truncf %7 : vector<32x32xf32> to vector<32x32xbf16>
    %c0_6 = arith.constant 0 : index
    %c0_7 = arith.constant 0 : index
    %9 = vector.load %arg4[%c0_6, %c0_7] : memref<32x16xbf16, #tpu.memory_space<vmem>>, vector<32x16xbf16>
    %cst_8 = arith.constant dense<0.000000e+00> : vector<32x16xf32>
    %10 = tpu.matmul %8, %9, %cst_8 {dimension_numbers = #tpu.dot_dimension_numbers<[1], [0], [0], [1], [0, 0, 1, 1], [], []>} : vector<32x32xbf16>, vector<32x16xbf16>, vector<32x16xf32> -> vector<32x16xf32>
    %c0_9 = arith.constant 0 : index
    %c0_10 = arith.constant 0 : index
    %11 = vector.load %arg5[%c0_9, %c0_10] : memref<1x16xf32, #tpu.memory_space<vmem>>, vector<1x16xf32>
    %12 = vector.broadcast %11 : vector<1x16xf32> to vector<32x16xf32>
    %13 = arith.addf %10, %12 : vector<32x16xf32>
    %cst_11 = arith.constant dense<0xFF800000> : vector<32xf32>
    %14 = vector.multi_reduction <maximumf>, %13, %cst_11 [1] : vector<32x16xf32> to vector<32xf32>
    %15 = vector.shape_cast %14 : vector<32xf32> to vector<32x1xf32>
    %16 = vector.broadcast %15 : vector<32x1xf32> to vector<32x16xf32>
    %17 = arith.subf %13, %16 : vector<32x16xf32>
    %18 = math.exp %17 : vector<32x16xf32>
    %cst_12 = arith.constant dense<0.000000e+00> : vector<32xf32>
    %19 = vector.multi_reduction <add>, %18, %cst_12 [1] : vector<32x16xf32> to vector<32xf32>
    %20 = vector.shape_cast %19 : vector<32xf32> to vector<32x1xf32>
    %21 = math.log %20 : vector<32x1xf32>
    %22 = vector.broadcast %21 : vector<32x1xf32> to vector<32x16xf32>
    %23 = arith.subf %17, %22 : vector<32x16xf32>
    %c0_13 = arith.constant 0 : index
    %c0_14 = arith.constant 0 : index
    %24 = vector.load %arg6[%c0_13, %c0_14] : memref<32x16xf32, #tpu.memory_space<vmem>>, vector<32x16xf32>
    tpu.vector_store %arg6[%c0_13, %c0_14], %23 {strides = array<i32>} : memref<32x16xf32, #tpu.memory_space<vmem>>, vector<32x16xf32>,
    return
  }
  func.func @transform_0(%arg0: i32) -> (i32, i32) {
    %c0_i32 = arith.constant 0 : i32
    %c0_i32_0 = arith.constant 0 : i32
    return %arg0, %c0_i32 : i32, i32
  }
  func.func @transform_1(%arg0: i32) -> (i32, i32) {
    %c0_i32 = arith.constant 0 : i32
    %c0_i32_0 = arith.constant 0 : i32
    %c0_i32_1 = arith.constant 0 : i32
    return %c0_i32, %c0_i32_0 : i32, i32
  }
  func.func @transform_2(%arg0: i32) -> (i32, i32) {
    %c0_i32 = arith.constant 0 : i32
    %c0_i32_0 = arith.constant 0 : i32
    %c0_i32_1 = arith.constant 0 : i32
    return %c0_i32, %c0_i32_0 : i32, i32
  }
  func.func @transform_3(%arg0: i32) -> (i32, i32) {
    %c0_i32 = arith.constant 0 : i32
    %c0_i32_0 = arith.constant 0 : i32
    %c0_i32_1 = arith.constant 0 : i32
    return %c0_i32, %c0_i32_0 : i32, i32
  }
  func.func @transform_4(%arg0: i32) -> (i32, i32) {
    %c0_i32 = arith.constant 0 : i32
    %c0_i32_0 = arith.constant 0 : i32
    %c0_i32_1 = arith.constant 0 : i32
    return %c0_i32, %c0_i32_0 : i32, i32
  }
  func.func @transform_5(%arg0: i32) -> (i32, i32) {
    %c0_i32 = arith.constant 0 : i32
    %c0_i32_0 = arith.constant 0 : i32
    return %arg0, %c0_i32 : i32, i32
  }
}

</mosaic_0001>

<bundles_post_ra>
// kernel: clf_block.1
= control target key start
LH: loop header
LB: loop body
LE: loop exit
PB: predicated region body
PF: predicated region fallthrough
CT: control target
= control target key end

     0   :  { %s630_s18 = smov 0   ;;  %s685_s0 = inlined_call_operand.vmem [shape: bf16[64,32], index: 0, kind: input, shape index: {}]   ;;  %s686_s1 = inlined_call_operand.vmem [shape: bf16[32,32], index: 1, kind: input, shape index: {}]   ;;  %s687_s2 = inlined_call_operand.vmem [shape: f32[1,32], index: 2, kind: input, shape index: {}]   ;;  %s688_s3 = inlined_call_operand.vmem [shape: bf16[32,16], index: 3, kind: input, shape index: {}]   ;;  %s689_s4 = inlined_call_operand.vmem [shape: f32[1,16], index: 4, kind: input, shape index: {}]   ;;  %s690_s5 = inlined_call_operand.vmem [shape: f32[64,16], index: 5, kind: output, shape index: {}]  }
   0x1 LB: > { %s515_s19 = sadd.s32 4294967295, %s598_s18   ;;  %p519_p0 = scmp.ge.s32.totalorder %s598_s18, 1  ;;  %s598_s18 = sphi %s630_s18, %s15_s18  }
   0x2   : > { %p188_p1 = scmp.lt.s32.totalorder %s598_s18, 3 }
   0x4   : > { %p189_p2 = pnand %p519_p0, %p188_p1 }
   0x5   : > { %s520_s22 = sshll.u32 (!%p189_p2), %s515_s19, 2 }
   0x6   : > { %192 = sbr.rel (%p189_p2) target bundleno = 746 (0x2ea), region = 40  ;;  %p217_p3 = scmp.lt.s32.totalorder (!%p189_p2), %s520_s22, 7 }
   0xb   : > { %v570_v0 = vld [vmem:[%s686_s1 + $0x8] sm:$0xff]   ;;  %v571_v1 = vld [vmem:[%s686_s1] sm:$0xff]   ;;  %s692_s22 = smov (!%p217_p3, %s520_s22), 7  ;;  %vm266_vm0 = vcmask 261120   ;;  %vm406_vm1 = vcmask 130048  }
   0xc   : > { %546 = vmatprep.subr.bf16.mxu0 %v570_v0  ;;  %s521_s25 = sshll.u32 %s692_s22, 2  ;;  %v574_v4 = vld [vmem:[%s688_s3 + $0x8] sm:$0xff]   ;;  %v575_v5 = vld [vmem:[%s688_s3] sm:$0xff]   ;;  %s523_s12 = sshll.u32 %s692_s22, 3 }
   0xd   : > { %547 = vmatpush3.bf16.msra.mxu0 %v570_v0  ;;  %s220_s28 = scalar_lea.vmem %s685_s0, %s521_s25  ;;  %554 = vmatprep.subr.bf16.mxu1 %v574_v4  ;;  %v524_v8 = vld [vmem:[%s687_s2] ss:$0 sm:$0xff]  ;;  %s226_s15 = scalar_lea.vmem %s690_s5, %s523_s12 }
   0xe   : > { %548 = vmatprep.subr.bf16.mxu0 %v571_v1  ;;  %v572_v2 = vld [vmem:[%s220_s28] sm:$0xff]   ;;  %v573_v3 = vld [vmem:[%s220_s28 + $0x8] sm:$0xff]   ;;  %555 = vmatpush3.bf16.msra.mxu1 %v574_v4 }
   0xf   : > { %550 = vmatprep.mubr.msk.bf16.mxu0 %vm266_vm0, %v572_v2  ;;  %556 = vmatprep.subr.bf16.mxu1 %v575_v5  ;;  %v531_v21 = vld [vmem:[%s689_s4] ss:$0 sm:$0xff] }
  0x11   : > { %549 = vmatpush3.bf16.msra.mxu0 %v571_v1 }
  0x12   : > { %557 = vmatpush3.bf16.msra.mxu1 %v575_v5 }
  0x14   : > { %551 = vmatmul.mubr.msk.bf16.vlgmr.msra.gmra.mxu0 %vm266_vm0, %v573_v3 }
  0xd4   : > { %v552_v6 = vpop.f32.mrf.mxu0 }
  0xd5   : > { %v316_v12 = vadd.f32 %v552_v6, %v524_v8 }
  0xd6   : > { %v307_v7 = vpop.f32.mrf.mxu0 }
  0xd7   : > { %v308_v10 = vadd.f32 %v524_v8, %v307_v7  ;;  %v324_v18 = vmax.f32 %v316_v12, 0.0 }
  0xd8   : > { %v553_v9 = vpop.f32.mrf.mxu0 }
  0xd9   : > { %v319_v11 = vadd.f32 %v553_v9, %v524_v8  ;;  %v322_v16 = vmax.f32 %v308_v10, 0.0 }
  0xda   : > { %v310_v13 = vpop.f32.mrf.mxu0 }
  0xdb   : > { %v311_v14 = vadd.f32 %v524_v8, %v310_v13  ;;  %v325_v15 = vmax.f32 %v319_v11, 0.0 }
  0xdd   : > { %v323_v17 = vmax.f32 %v311_v14, 0.0  ;;  %v327_v20 = vpack.c.bf16 %v325_v15, %v324_v18 }
  0xdf   : > { %v326_v19 = vpack.c.bf16 %v323_v17, %v322_v16 }
  0xe1   : > { %558 = vmatprep.mubr.msk.bf16.mxu1 %vm266_vm0, %v326_v19 }
  0xe2   : > { %559 = vmatmul.mubr.msk.bf16.vlgmr.msra.gmra.mxu1 %vm266_vm0, %v327_v20 }
 0x1a2   : > { %v560_v22 = vpop.f32.mrf.mxu1 }
 0x1a3   : > { %v400_v23 = vadd.f32 %v560_v22, %v531_v21 }
 0x1a4   : > { %v391_v24 = vpop.f32.mrf.mxu1 }
 0x1a5   : > { %v392_v25 = vadd.f32 %v531_v21, %v391_v24  ;;  %v413_v26 = vsel %vm406_vm1, %v400_v23, -inf }
 0x1a6   : > { %414 = vmax.xlane.f32.xlu1 %v413_v26  ;;  %v561_v27 = vpop.f32.mrf.mxu1 }
 0x1a7   : > { %v403_v28 = vadd.f32 %v561_v27, %v531_v21  ;;  %v407_v29 = vsel %vm406_vm1, %v392_v25, -inf }
 0x1a8   : > { %v394_v30 = vpop.f32.mrf.mxu1  ;;  %408 = vmax.xlane.f32.xlu0 %v407_v29 }
 0x1a9   : > { %v395_v31 = vadd.f32 %v531_v21, %v394_v30  ;;  %v416_v32 = vsel %vm406_vm1, %v403_v28, -inf }
 0x1aa   : > { %417 = vmax.xlane.f32.xlu1 %v416_v32 }
 0x1ab   : > { %v410_v33 = vsel %vm406_vm1, %v395_v31, -inf }
 0x1ac   : > { %411 = vmax.xlane.f32.xlu0 %v410_v33 }
 0x22f   : > { %v415_v34 = vpop.xlane.xlu1 %414 }
 0x230   : > { %v421_v35 = vsub.f32 %v400_v23, %v415_v34 }
 0x231   : > { %v409_v36 = vpop.xlane.xlu0 %408 }
 0x232   : > { %v419_v37 = vsub.f32 %v392_v25, %v409_v36  ;;  %v427_v39 = vmul.f32 1.442695, %v421_v35 }
 0x233   : > { %v418_v38 = vpop.xlane.xlu1 %417 }
 0x234   : > { %v423_v40 = vmul.f32 1.442695, %v419_v37  ;;  %v422_v41 = vsub.f32 %v403_v28, %v418_v38 }
 0x235   : > { %v412_v42 = vpop.xlane.xlu0 %411 }
 0x236   : > { %576 = vpow2.f32 %v423_v40  ;;  %v420_v43 = vsub.f32 %v395_v31, %v412_v42  ;;  %v429_v44 = vmul.f32 1.442695, %v422_v41 }
 0x237   : > { %578 = vpow2.f32 %v427_v39 }
 0x238   : > { %v425_v45 = vmul.f32 1.442695, %v420_v43 }
 0x23a   : > { %580 = vpow2.f32 %v425_v45 }
 0x23b   : > { %582 = vpow2.f32 %v429_v44 }
 0x243   : > { %v577_v46 = vpop.eup %576 }
 0x244   : > { %v431_v47 = vsel %vm406_vm1, %v577_v46, 0.0  ;;  %v579_v48 = vpop.eup %578 }
 0x245   : > { %432 = vadd.xlane.f32.xlu0 %v431_v47  ;;  %v437_v50 = vsel %vm406_vm1, %v579_v48, 0.0 }
 0x247   : > { %v581_v49 = vpop.eup %580 }
 0x248   : > { %v434_v51 = vsel %vm406_vm1, %v581_v49, 0.0  ;;  %v583_v52 = vpop.eup %582 }
 0x249   : > { %438 = vadd.xlane.f32.xlu0 %v437_v50  ;;  %435 = vadd.xlane.f32.xlu1 %v434_v51  ;;  %v440_v53 = vsel %vm406_vm1, %v583_v52, 0.0 }
 0x24d   : > { %441 = vadd.xlane.f32.xlu1 %v440_v53 }
 0x2ce   : > { %v433_v54 = vpop.xlane.xlu0 %432 }
 0x2cf   : > { %584 = vlog2.f32 %v433_v54 }
 0x2d2   : > { %v436_v55 = vpop.xlane.xlu1 %435  ;;  %v439_v56 = vpop.xlane.xlu0 %438 }
 0x2d3   : > { %586 = vlog2.f32 %v436_v55 }
 0x2d4   : > { %588 = vlog2.f32 %v439_v56 }
 0x2d6   : > { %v442_v57 = vpop.xlane.xlu1 %441 }
 0x2d7   : > { %590 = vlog2.f32 %v442_v57 }
 0x2dc   : > { %v585_v58 = vpop.eup %584 }
 0x2dd   : > { %v444_v59 = vmul.f32 0.6931472, %v585_v58 }
 0x2df   : > { %v451_v60 = vsub.f32 %v419_v37, %v444_v59 }
 0x2e0   : > { %v587_v61 = vpop.eup %586 }
 0x2e1   : > { %v589_v62 = vpop.eup %588  ;;  %455 = vst.msk [vmem:[%s226_s15] sm:$0xff] %vm406_vm1, %v451_v60  ;;  %v446_v63 = vmul.f32 0.6931472, %v587_v61 }
 0x2e2   : > { %v448_v0 = vmul.f32 0.6931472, %v589_v62 }
 0x2e3   : > { %v452_v1 = vsub.f32 %v420_v43, %v446_v63 }
 0x2e4   : > { %v591_v2 = vpop.eup %590  ;;  %v453_v3 = vsub.f32 %v421_v35, %v448_v0 }
 0x2e5   : > { %456 = vst.msk [vmem:[%s226_s15 + $0x8] sm:$0xff] %vm406_vm1, %v452_v1  ;;  %v450_v4 = vmul.f32 0.6931472, %v591_v2 }
 0x2e6   : > { %457 = vst.msk [vmem:[%s226_s15 + $0x10] sm:$0xff] %vm406_vm1, %v453_v3 }
 0x2e7   : > { %v454_v5 = vsub.f32 %v422_v41, %v450_v4 }
 0x2e9   : > { %458 = vst.msk [vmem:[%s226_s15 + $0x18] sm:$0xff] %vm406_vm1, %v454_v5 }
 0x2ea PF: > { %s15_s18 = sadd.s32 1, %s598_s18  }
 0x2eb   : > { %p12_p4 = scmp.ge.s32.totalorder %s15_s18, 4  }
 0x2ed   :  { %14 = sbr.rel (!%p12_p4) target bundleno = 1 (0x1), region = 70 }

</bundles_post_ra>
